<compile_context>
chip_gen: v5e
topology: v5e:2x2
jax: 0.10.0
libtpu: 0.0.40
codegen_flags: <defaults>
</compile_context>

<pallas_src>
import functools
import math

import jax
import jax.numpy as jnp
from jax.experimental import pallas as pl
from jax.experimental.pallas import tpu as pltpu


def _sublayer_kernel(x_ref, g_ref, b_ref, w_ref, bias_ref, *rest,
                     eps, h_real, inv_keep, apply_dropout, needs_mask):
    if apply_dropout:
        drop_ref, o_ref = rest
    else:
        (o_ref,) = rest

    x = x_ref[...].astype(jnp.float32)               # (TM, Hp); pad lanes are 0
    hp = x.shape[-1]

    # ---- LayerNorm (module semantics: unbiased std, eps added to std) ----
    mean = jnp.sum(x, axis=-1, keepdims=True) * (1.0 / h_real)
    diff = x - mean
    if needs_mask:
        lane = jax.lax.broadcasted_iota(jnp.int32, (1, hp), 1)
        diff = jnp.where(lane < h_real, diff, 0.0)   # zero padded lanes
    var = jnp.sum(diff * diff, axis=-1, keepdims=True) * (1.0 / (h_real - 1))
    inv_std = 1.0 / (jnp.sqrt(var) + eps)            # per-row (TM, 1), not per-elem
    normed = (diff * inv_std) * g_ref[...] + b_ref[...]

    # ---- sublayer: Linear(H, H) — bf16 MXU operands, f32 accumulation ----
    y = jnp.dot(normed.astype(jnp.bfloat16), w_ref[...],
                preferred_element_type=jnp.float32) + bias_ref[...]

    # ---- dropout (inverted scaling; mask streamed in, static bypass) ----
    if apply_dropout:
        y = y * (drop_ref[...].astype(jnp.float32) * inv_keep)

    # ---- residual add (re-read x instead of keeping f32 copy live) ----
    o_ref[...] = (x_ref[...].astype(jnp.float32) + y).astype(o_ref.dtype)


def _round_up(n, m):
    return ((n + m - 1) // m) * m


def _pad_last(a, target):
    pad = target - a.shape[-1]
    if pad == 0:
        return a
    return jnp.pad(a, [(0, 0)] * (a.ndim - 1) + [(0, pad)])


def sublayer_connection(x, gamma, beta, w, bias, *, dropout_rate=0.0,
                        dropout_key=None, eps=1e-6, tile_rows=None):
    """x: (B, S, H).  Returns x + dropout(Linear(LayerNorm(x)))."""
    B, S, H = x.shape
    R = B * S
    Hp = _round_up(H, 128)          # lane-dense last dim (unmasked stores, MXU-wide)
    needs_mask = Hp != H

    x2 = _pad_last(x.reshape(R, H), Hp)
    g2 = _pad_last(gamma.reshape(1, H).astype(jnp.float32), Hp)
    b2 = _pad_last(beta.reshape(1, H).astype(jnp.float32), Hp)
    bias2 = _pad_last(bias.reshape(1, H).astype(jnp.float32), Hp)
    # Ship W as bf16: halves its VMEM/HBM footprint and matches the bf16 MXU.
    w2 = jnp.pad(w, ((0, Hp - H), (0, Hp - H))).astype(jnp.bfloat16)

    apply_dropout = float(dropout_rate) > 0.0
    keep_prob = 1.0 - float(dropout_rate)
    inv_keep = (1.0 / keep_prob) if keep_prob > 0.0 else 0.0

    # Row tile: largest power-of-two chunk whose f32 stream stays ~<= 4 MiB
    # (keeps double-buffered streams + W under the 64 MiB v7x VMEM ceiling).
    if tile_rows is None:
        tile_rows = 512
        while tile_rows > 8 and tile_rows * Hp * 4 > (4 << 20):
            tile_rows //= 2
    TM = min(tile_rows, R)
    grid = (pl.cdiv(R, TM),)

    inputs = [x2, g2, b2, w2, bias2]
    in_specs = [
        pl.BlockSpec((TM, Hp), lambda i: (i, 0)),   # x rows (pipelined)
        pl.BlockSpec((1, Hp), lambda i: (0, 0)),    # gamma (resident)
        pl.BlockSpec((1, Hp), lambda i: (0, 0)),    # beta  (resident)
        pl.BlockSpec((Hp, Hp), lambda i: (0, 0)),   # W     (resident)
        pl.BlockSpec((1, Hp), lambda i: (0, 0)),    # bias  (resident)
    ]
    if apply_dropout:
        if dropout_key is None:
            dropout_key = jax.random.PRNGKey(0)
        # TODO(synk): in-kernel pltpu.prng_random_bits would avoid this extra
        # HBM stream, but it has no interpret-mode lowering; the host-side
        # jax.random mask keeps the kernel portable and reproducible.
        keep = jax.random.bernoulli(dropout_key, p=keep_prob, shape=(R, Hp))
        inputs.append(keep.astype(jnp.bfloat16))
        in_specs.append(pl.BlockSpec((TM, Hp), lambda i: (i, 0)))

    out_spec = pl.BlockSpec((TM, Hp), lambda i: (i, 0))

    # Explicit VMEM budget: 2x double-buffered activation streams + resident
    # bf16 weight + f32 intermediates, clamped to v7x's 64 MiB per TC.
    xb = x2.dtype.itemsize
    act_stream = TM * Hp * (2 * xb + (2 if apply_dropout else 0))
    scratch = 6 * TM * Hp * 4
    vmem_bytes = 2 * act_stream + 2 * Hp * Hp * 2 + scratch + (2 << 20)
    vmem_bytes = int(max(32 << 20, min(vmem_bytes, 64 << 20)))

    kernel = functools.partial(
        _sublayer_kernel, eps=float(eps), h_real=H, inv_keep=inv_keep,
        apply_dropout=apply_dropout, needs_mask=needs_mask)

    out2 = pl.pallas_call(
        kernel,
        out_shape=jax.ShapeDtypeStruct((R, Hp), x.dtype),
        grid_spec=pltpu.PrefetchScalarGridSpec(
            num_scalar_prefetch=0,
            grid=grid,
            in_specs=in_specs,
            out_specs=out_spec,
        ),
        compiler_params=pltpu.CompilerParams(
            dimension_semantics=("parallel",),   # rows independent -> megacore
            vmem_limit_bytes=vmem_bytes),
    )(*inputs)

    return out2[:, :H].reshape(B, S, H)


def _reference(x, gamma, beta, w, bias, *, eps=1e-6, keep=None, keep_prob=1.0):
    """Pure-JAX mirror of the PyTorch forward (f32 math)."""
    mean = x.mean(-1, keepdims=True)
    std = jnp.std(x, axis=-1, keepdims=True, ddof=1)   # torch .std() unbiased
    normed = gamma * (x - mean) / (std + eps) + beta
    y = normed @ w + bias
    if keep is not None:
        y = y * keep / keep_prob
    return x + y


if __name__ == "__main__":
    B, S, H = 2, 8, 32
    dropout_rate = 0.1

    key = jax.random.PRNGKey(0)
    kx, kw, kb, kd = jax.random.split(key, 4)

    x = jax.random.normal(kx, (B, S, H), dtype=jnp.float32)

    # LayerNorm params: a_2 = ones, b_2 = zeros (as in the module __init__)
    gamma = jnp.ones((H,), dtype=jnp.float32)
    beta = jnp.zeros((H,), dtype=jnp.float32)

    # Deterministic synthetic "sublayer" = Linear(H, H)
    bound = 1.0 / math.sqrt(H)
    w = jax.random.uniform(kw, (H, H), dtype=jnp.float32,
                           minval=-bound, maxval=bound)
    bias = jax.random.uniform(kb, (H,), dtype=jnp.float32,
                              minval=-bound, maxval=bound)

    # 1) Deterministic path (dropout compiled out) vs pure-JAX reference.
    out_nodrop = jax.block_until_ready(
        sublayer_connection(x, gamma, beta, w, bias, dropout_rate=0.0))
    ref = _reference(x, gamma, beta, w, bias)
    assert out_nodrop.shape == (B, S, H)
    # bf16 MXU operands (f32 accumulate) vs f32 reference -> loosened tolerance.
    assert jnp.allclose(out_nodrop, ref, rtol=2e-2, atol=2e-2), \
        "mismatch vs reference (no dropout)"

    # 2) Train-mode path with dropout; the mask is reproducible host-side, so
    #    we can check the full dropout path against the reference too.
    out_drop = jax.block_until_ready(
        sublayer_connection(x, gamma, beta, w, bias,
                            dropout_rate=dropout_rate, dropout_key=kd))
    Hp = _round_up(H, 128)
    keep_full = jax.random.bernoulli(kd, p=1.0 - dropout_rate, shape=(B * S, Hp))
    keep = keep_full[:, :H].reshape(B, S, H).astype(jnp.float32)
    ref_drop = _reference(x, gamma, beta, w, bias,
                          keep=keep, keep_prob=1.0 - dropout_rate)
    assert out_drop.shape == (B, S, H)
    assert bool(jnp.all(jnp.isfinite(out_drop)))
    assert jnp.allclose(out_drop, ref_drop, rtol=2e-2, atol=2e-2), \
        "mismatch vs reference (dropout)"

    print("KERNEL_OK")
</pallas_src>

<mosaic_0001>
module attributes {stable_mosaic.version = 11 : i64} {
  func.func @_sublayer_kernel(%arg0: i32, %arg1: memref<16x128xf32, #tpu.memory_space<vmem>>, %arg2: memref<1x128xf32, #tpu.memory_space<vmem>>, %arg3: memref<1x128xf32, #tpu.memory_space<vmem>>, %arg4: memref<128x128xbf16, #tpu.memory_space<vmem>>, %arg5: memref<1x128xf32, #tpu.memory_space<vmem>>, %arg6: memref<16x128xf32, #tpu.memory_space<vmem>>) attributes {dimension_semantics = [#tpu.dimension_semantics<parallel>], iteration_bounds = array<i64: 1>, scalar_prefetch = 0 : i64, scratch_operands = 0 : i64, tpu.core_type = #tpu.core_type<tc>, window_params = [{transform_indices = @transform_0, window_bounds = array<i64: 16, 128>}, {pipeline_mode = #tpu.pipeline_mode<synchronous>, transform_indices = @transform_1, window_bounds = array<i64: 1, 128>}, {pipeline_mode = #tpu.pipeline_mode<synchronous>, transform_indices = @transform_2, window_bounds = array<i64: 1, 128>}, {pipeline_mode = #tpu.pipeline_mode<synchronous>, transform_indices = @transform_3, window_bounds = array<i64: 128, 128>}, {pipeline_mode = #tpu.pipeline_mode<synchronous>, transform_indices = @transform_4, window_bounds = array<i64: 1, 128>}, {transform_indices = @transform_5, window_bounds = array<i64: 16, 128>}]} {
    %c0 = arith.constant 0 : index
    %c0_0 = arith.constant 0 : index
    %0 = vector.load %arg1[%c0, %c0_0] : memref<16x128xf32, #tpu.memory_space<vmem>>, vector<16x128xf32>
    %cst = arith.constant dense<0.000000e+00> : vector<16xf32>
    %1 = vector.multi_reduction <add>, %0, %cst [1] : vector<16x128xf32> to vector<16xf32>
    %2 = vector.shape_cast %1 : vector<16xf32> to vector<16x1xf32>
    %cst_1 = arith.constant 3.125000e-02 : f32
    %3 = vector.broadcast %cst_1 : f32 to vector<16x1xf32>
    %4 = arith.mulf %2, %3 : vector<16x1xf32>
    %5 = vector.broadcast %4 : vector<16x1xf32> to vector<16x128xf32>
    %6 = arith.subf %0, %5 : vector<16x128xf32>
    %7 = tpu.iota {dimensions = array<i32: 1>} : vector<1x128xi32>
    %c32_i32 = arith.constant 32 : i32
    %8 = vector.broadcast %c32_i32 : i32 to vector<1x128xi32>
    %9 = arith.cmpi slt, %7, %8 : vector<1x128xi32>
    %cst_2 = arith.constant 0.000000e+00 : f32
    %10 = vector.shape_cast %9 : vector<1x128xi1> to vector<1x128xi1>
    %11 = vector.broadcast %10 : vector<1x128xi1> to vector<16x128xi1>
    %12 = vector.broadcast %cst_2 : f32 to vector<16x128xf32>
    %13 = arith.select %11, %6, %12 : vector<16x128xi1>, vector<16x128xf32>
    %14 = arith.mulf %13, %13 : vector<16x128xf32>
    %cst_3 = arith.constant dense<0.000000e+00> : vector<16xf32>
    %15 = vector.multi_reduction <add>, %14, %cst_3 [1] : vector<16x128xf32> to vector<16xf32>
    %16 = vector.shape_cast %15 : vector<16xf32> to vector<16x1xf32>
    %cst_4 = arith.constant 0.0322580636 : f32
    %17 = vector.broadcast %cst_4 : f32 to vector<16x1xf32>
    %18 = arith.mulf %16, %17 : vector<16x1xf32>
    %19 = math.sqrt %18 : vector<16x1xf32>
    %cst_5 = arith.constant 9.99999997E-7 : f32
    %20 = vector.broadcast %cst_5 : f32 to vector<16x1xf32>
    %21 = arith.addf %19, %20 : vector<16x1xf32>
    %cst_6 = arith.constant 1.000000e+00 : f32
    %22 = vector.broadcast %cst_6 : f32 to vector<16x1xf32>
    %23 = arith.divf %22, %21 : vector<16x1xf32>
    %24 = vector.broadcast %23 : vector<16x1xf32> to vector<16x128xf32>
    %25 = arith.mulf %13, %24 : vector<16x128xf32>
    %c0_7 = arith.constant 0 : index
    %c0_8 = arith.constant 0 : index
    %26 = vector.load %arg2[%c0_7, %c0_8] : memref<1x128xf32, #tpu.memory_space<vmem>>, vector<1x128xf32>
    %27 = vector.broadcast %26 : vector<1x128xf32> to vector<16x128xf32>
    %28 = arith.mulf %25, %27 : vector<16x128xf32>
    %c0_9 = arith.constant 0 : index
    %c0_10 = arith.constant 0 : index
    %29 = vector.load %arg3[%c0_9, %c0_10] : memref<1x128xf32, #tpu.memory_space<vmem>>, vector<1x128xf32>
    %30 = vector.broadcast %29 : vector<1x128xf32> to vector<16x128xf32>
    %31 = arith.addf %28, %30 : vector<16x128xf32>
    %32 = arith.truncf %31 : vector<16x128xf32> to vector<16x128xbf16>
    %c0_11 = arith.constant 0 : index
    %c0_12 = arith.constant 0 : index
    %33 = vector.load %arg4[%c0_11, %c0_12] : memref<128x128xbf16, #tpu.memory_space<vmem>>, vector<128x128xbf16>
    %cst_13 = arith.constant dense<0.000000e+00> : vector<16x128xf32>
    %34 = tpu.matmul %32, %33, %cst_13 {dimension_numbers = #tpu.dot_dimension_numbers<[1], [0], [0], [1], [0, 0, 1, 1], [], []>} : vector<16x128xbf16>, vector<128x128xbf16>, vector<16x128xf32> -> vector<16x128xf32>
    %c0_14 = arith.constant 0 : index
    %c0_15 = arith.constant 0 : index
    %35 = vector.load %arg5[%c0_14, %c0_15] : memref<1x128xf32, #tpu.memory_space<vmem>>, vector<1x128xf32>
    %36 = vector.broadcast %35 : vector<1x128xf32> to vector<16x128xf32>
    %37 = arith.addf %34, %36 : vector<16x128xf32>
    %c0_16 = arith.constant 0 : index
    %c0_17 = arith.constant 0 : index
    %38 = vector.load %arg1[%c0_16, %c0_17] : memref<16x128xf32, #tpu.memory_space<vmem>>, vector<16x128xf32>
    %39 = arith.addf %38, %37 : vector<16x128xf32>
    %c0_18 = arith.constant 0 : index
    %c0_19 = arith.constant 0 : index
    %40 = vector.load %arg6[%c0_18, %c0_19] : memref<16x128xf32, #tpu.memory_space<vmem>>, vector<16x128xf32>
    tpu.vector_store %arg6[%c0_18, %c0_19], %39 {strides = array<i32>} : memref<16x128xf32, #tpu.memory_space<vmem>>, vector<16x128xf32>,
    return
  }
  func.func @transform_0(%arg0: i32) -> (i32, i32) {
    %c0_i32 = arith.constant 0 : i32
    %c0_i32_0 = arith.constant 0 : i32
    return %arg0, %c0_i32 : i32, i32
  }
  func.func @transform_1(%arg0: i32) -> (i32, i32) {
    %c0_i32 = arith.constant 0 : i32
    %c0_i32_0 = arith.constant 0 : i32
    %c0_i32_1 = arith.constant 0 : i32
    return %c0_i32, %c0_i32_0 : i32, i32
  }
  func.func @transform_2(%arg0: i32) -> (i32, i32) {
    %c0_i32 = arith.constant 0 : i32
    %c0_i32_0 = arith.constant 0 : i32
    %c0_i32_1 = arith.constant 0 : i32
    return %c0_i32, %c0_i32_0 : i32, i32
  }
  func.func @transform_3(%arg0: i32) -> (i32, i32) {
    %c0_i32 = arith.constant 0 : i32
    %c0_i32_0 = arith.constant 0 : i32
    %c0_i32_1 = arith.constant 0 : i32
    return %c0_i32, %c0_i32_0 : i32, i32
  }
  func.func @transform_4(%arg0: i32) -> (i32, i32) {
    %c0_i32 = arith.constant 0 : i32
    %c0_i32_0 = arith.constant 0 : i32
    %c0_i32_1 = arith.constant 0 : i32
    return %c0_i32, %c0_i32_0 : i32, i32
  }
  func.func @transform_5(%arg0: i32) -> (i32, i32) {
    %c0_i32 = arith.constant 0 : i32
    %c0_i32_0 = arith.constant 0 : i32
    return %arg0, %c0_i32 : i32, i32
  }
}

</mosaic_0001>

<bundles_post_ra>
// kernel: tpu_custom_call.1
= control target key start
LH: loop header
LB: loop body
LE: loop exit
PB: predicated region body
PF: predicated region fallthrough
CT: control target
= control target key end

     0   :  { %10 = vsyncpa [#allocation3], 0  ;;  %s511_s0 = inlined_call_operand.hbm [shape: f32[16,128], index: 0, kind: input, shape index: {}]   ;;  %s512_s1 = inlined_call_operand.hbm [shape: f32[1,128], index: 1, kind: input, shape index: {}]   ;;  %s513_s2 = inlined_call_operand.vmem [shape: f32[1,128], index: 2, kind: input, shape index: {}]   ;;  %s514_s3 = inlined_call_operand.hbm [shape: bf16[128,128], index: 3, kind: input, shape index: {}]   ;;  %s515_s4 = inlined_call_operand.vmem [shape: f32[1,128], index: 4, kind: input, shape index: {}]   ;;  %s516_s5 = inlined_call_operand.hbm [shape: f32[16,128], index: 5, kind: output, shape index: {}]  }
   0x1   :  { %11 = vsyncpa [#allocation6], 0  ;;  %s31_s20 = sshll.u32 %s512_s1, 4  ;;  %s32_s20 = int_to_ptr.hbm [resolvable:$true] %s31_s20 }
   0x2   :  { %12 = vsyncpa [#allocation4], 0  ;;  %s429_s21 = smov [#allocation5]   ;;  %s17_s25 = sshll.u32 %s511_s0, 4  ;;  %s18_s25 = int_to_ptr.hbm [resolvable:$true] %s17_s25 }
   0x3   :  { %s33_s22 = sshll.u32 %s429_s21, 4  ;;  %s430_s26 = smov [#allocation2]   ;;  %s34_s22 = int_to_ptr.vmem [resolvable:$true] %s33_s22 }
   0x4   :  { %36 = dma.hbm_to_vmem [thread:$0]  %s32_s20, 16, %s34_s22, [#allocation6]  }
   0x5   :  { %s19_s27 = sshll.u32 %s430_s26, 4  ;;  %s431_s28 = smov 128   ;;  %s20_s27 = int_to_ptr.vmem [resolvable:$true] %s19_s27 }
   0x6   :  { %s432_s29 = smov 8   ;;  %s43_s6 = sshll.u32 %s514_s3, 4  ;;  %s44_s6 = int_to_ptr.hbm [resolvable:$true] %s43_s6 }
   0x7   :  { %25 = dma.hbm_to_vmem [thread:$0]  %s18_s25, 256, %s20_s27, [#allocation3], %s431_s28, %s431_s28, %s432_s29  }
   0x8   :  { %s433_s7 = smov [#allocation7]   ;;  %s434_s0 = smov 64  }
   0x9   :  { %s45_s8 = sshll.u32 %s433_s7, 4  ;;  %s435_s9 = smov 4   ;;  %s46_s8 = int_to_ptr.vmem [resolvable:$true] %s45_s8 }
   0xa   :  { %51 = dma.hbm_to_vmem [thread:$0]  %s44_s6, 1024, %s46_s8, [#allocation6], %s434_s0, %s434_s0, %s435_s9  }
   0xb   :  { %423 = dma.done.wait [#allocation3], 256  }
   0xc   :  { %424 = vsyncadd [#allocation3], 4294967040 }
   0xd   :  { %425 = dma.done.wait [#allocation6], 1040  }
   0xe   :  { %426 = vsyncadd [#allocation6], 4294966256  ;;  %v479_v0 = vld [vmem:[#allocation2] sm:$0xff]  ;;  %v482_v1 = vld [vmem:[#allocation2 + $0x8] sm:$0xff]  ;;  %v76_v2 = vlaneseq  ;;  %s436_s13 = smov [#allocation8]  }
   0xf   :  { %68 = vadd.xlane.f32.xlu0 %v479_v0  ;;  %v307_v14 = vld [vmem:[#allocation7 + $0x38] sm:$0xff]  ;;  %v306_v15 = vld [vmem:[#allocation7 + $0x30] sm:$0xff]  ;;  %v305_v17 = vld [vmem:[#allocation7 + $0x28] sm:$0xff]  ;;  %s252_s14 = sshll.u32 %s436_s13, 4  ;;  %s253_s14 = int_to_ptr.vmem [resolvable:$true] %s252_s14 }
  0x10   :  { %v77_v3 = vand.u32 127, %v76_v2  ;;  %230 = vmatpush.bf16.msra.mxu0 %v307_v14  ;;  %v304_v19 = vld [vmem:[#allocation7 + $0x20] sm:$0xff]  ;;  %v303_v21 = vld [vmem:[#allocation7 + $0x18] sm:$0xff]  ;;  %v302_v26 = vld [vmem:[#allocation7 + $0x10] sm:$0xff] }
  0x11   :  { %v301_v29 = vld [vmem:[#allocation7 + $0x8] sm:$0xff]  ;;  %v300_v35 = vld [vmem:[#allocation7] sm:$0xff] }
  0x12   :  { %vm78_vm0 = vcmp.lt.s32.totalorder %v77_v3, 32 }
  0x14   :  { %231 = vmatpush.bf16.msra.mxu0 %v306_v15 }
  0x17   :  { %70 = vadd.xlane.f32.xlu0 %v482_v1 }
  0x18   :  { %232 = vmatpush.bf16.msra.mxu0 %v305_v17 }
  0x1c   :  { %233 = vmatpush.bf16.msra.mxu0 %v304_v19 }
  0x20   :  { %234 = vmatpush.bf16.msra.mxu0 %v303_v21 }
  0x24   :  { %235 = vmatpush.bf16.msra.mxu0 %v302_v26 }
  0x28   :  { %236 = vmatpush.bf16.msra.mxu0 %v301_v29 }
  0x2c   :  { %237 = vmatpush.bf16.msra.mxu0 %v300_v35 }
  0x82   :  { %v69_v4 = vpop.xlane.xlu0 %68 }
  0x83   :  { %v72_v5 = vmul.f32 0.03125, %v69_v4  ;;  %v316_v4 = vld [vmem:[#allocation5] ss:$0 sm:$0xff] }
  0x85   :  { %v74_v6 = vsub.f32 %v479_v0, %v72_v5 }
  0x87   :  { %v486_v7 = vsel %vm78_vm0, %v74_v6, 0.0 }
  0x88   :  { %v83_v8 = vmul.f32 %v486_v7, %v486_v7 }
  0x8a   :  { %85 = vadd.xlane.f32.xlu1 %v83_v8  ;;  %v71_v9 = vpop.xlane.xlu0 %70 }
  0x8b   :  { %v73_v10 = vmul.f32 0.03125, %v71_v9 }
  0x8d   :  { %v75_v11 = vsub.f32 %v482_v1, %v73_v10 }
  0x8f   :  { %v491_v12 = vsel %vm78_vm0, %v75_v11, 0.0  ;;  %v317_v11 = vld [vmem:[%s513_s2] ss:$0 sm:$0xff]  ;;  %s254_s2 = sshll.u32 %s516_s5, 4  ;;  %s255_s2 = int_to_ptr.hbm [resolvable:$true] %s254_s2 }
  0x90   :  { %v84_v13 = vmul.f32 %v491_v12, %v491_v12 }
  0x92   :  { %87 = vadd.xlane.f32.xlu1 %v84_v13 }
  0xfd   :  { %v86_v16 = vpop.xlane.xlu1 %85 }
  0xfe   :  { %v89_v18 = vmul.f32 0.032258064, %v86_v16 }
 0x100   :  { %319 = vrsqrt.f32 %v89_v18  ;;  %vm98_vm1 = vcmp.eq.f32.partialorder %v89_v18, inf  ;;  %v101_v36 = vand.u32 2147483648, %v89_v18  ;;  %vm100_vm2 = vcmp.eq.f32.partialorder %v89_v18, 0.0 }
 0x105   :  { %v88_v20 = vpop.xlane.xlu1 %87 }
 0x106   :  { %v320_v22 = vpop.eup %319  ;;  %v90_v23 = vmul.f32 0.032258064, %v88_v20 }
 0x107   :  { %v92_v24 = vmul.f32 %v320_v22, %v89_v18 }
 0x108   :  { %321 = vrsqrt.f32 %v90_v23  ;;  %vm110_vm3 = vcmp.eq.f32.partialorder %v90_v23, inf  ;;  %v113_v44 = vand.u32 2147483648, %v90_v23  ;;  %vm112_vm4 = vcmp.eq.f32.partialorder %v90_v23, 0.0 }
 0x109   :  { %v93_v25 = vmul.f32 %v320_v22, %v92_v24 }
 0x10b   :  { %v94_v27 = vmul.f32 0.5, %v93_v25 }
 0x10d   :  { %v95_v28 = vsub.f32 1.5, %v94_v27 }
 0x10e   :  { %v322_v30 = vpop.eup %321 }
 0x10f   :  { %v96_v31 = vmul.f32 %v320_v22, %v95_v28  ;;  %v104_v32 = vmul.f32 %v322_v30, %v90_v23 }
 0x111   :  { %v97_v33 = vmul.f32 %v96_v31, %v89_v18  ;;  %v105_v34 = vmul.f32 %v322_v30, %v104_v32 }
 0x113   :  { %v99_v37 = vsel %vm98_vm1, %v89_v18, %v97_v33  ;;  %v106_v38 = vmul.f32 0.5, %v105_v34 }
 0x114   :  { %v102_v39 = vsel %vm100_vm2, %v101_v36, %v99_v37 }
 0x115   :  { %v107_v40 = vsub.f32 1.5, %v106_v38  ;;  %v115_v41 = vadd.f32 1e-06, %v102_v39 }
 0x117   :  { %v108_v42 = vmul.f32 %v322_v30, %v107_v40  ;;  %323 = vrcp.f32 %v115_v41  ;;  %v128_v52 = vand.u32 2147483648, %v115_v41  ;;  %vm122_vm6 = vweird.f32 %v115_v41 }
 0x118   :  { %v126_v54 = vand.u32 2147483647, %v115_v41 }
 0x119   :  { %v109_v43 = vmul.f32 %v108_v42, %v90_v23  ;;  %v129_v58 = vor.u32 1.1754944e-38, %v128_v52 }
 0x11a   :  { %vm127_vm8 = vcmp.eq.f32.partialorder %v126_v54, 8.507059e+37 }
 0x11b   :  { %v111_v45 = vsel %vm110_vm3, %v90_v23, %v109_v43 }
 0x11c   :  { %v114_v46 = vsel %vm112_vm4, %v113_v44, %v111_v45 }
 0x11d   :  { %v324_v47 = vpop.eup %323  ;;  %v116_v48 = vadd.f32 1e-06, %v114_v46 }
 0x11e   :  { %v118_v49 = vmul.f32 %v324_v47, %v115_v41  ;;  %vm123_vm5 = vweird.f32 %v324_v47 }
 0x11f   :  { %325 = vrcp.f32 %v116_v48  ;;  %vm124_vm7 = vmor %vm122_vm6, %vm123_vm5  ;;  %v143_v61 = vand.u32 2147483648, %v116_v48  ;;  %v141_v63 = vand.u32 2147483647, %v116_v48  ;;  %vm137_vm10 = vweird.f32 %v116_v48 }
 0x120   :  { %v119_v50 = vsub.f32 1.0, %v118_v49 }
 0x121   :  { %v144_v5 = vor.u32 1.1754944e-38, %v143_v61  ;;  %vm142_vm12 = vcmp.eq.f32.partialorder %v141_v63, 8.507059e+37 }
 0x122   :  { %v120_v51 = vmul.f32 %v324_v47, %v119_v50 }
 0x124   :  { %v121_v53 = vadd.f32 %v324_v47, %v120_v51 }
 0x125   :  { %v326_v55 = vpop.eup %325 }
 0x126   :  { %v125_v56 = vsel %vm124_vm7, %v324_v47, %v121_v53  ;;  %v133_v57 = vmul.f32 %v326_v55, %v116_v48  ;;  %vm138_vm9 = vweird.f32 %v326_v55 }
 0x127   :  { %v130_v60 = vsel %vm127_vm8, %v129_v58, %v125_v56  ;;  %vm139_vm11 = vmor %vm137_vm10, %vm138_vm9 }
 0x128   :  { %v134_v59 = vsub.f32 1.0, %v133_v57  ;;  %v147_v3 = vmul.f32 %v130_v60, %v486_v7  ;;  %v318_v7 = vld [vmem:[%s515_s4] ss:$0 sm:$0xff] }
 0x12a   :  { %v135_v62 = vmul.f32 %v326_v55, %v134_v59  ;;  %v153_v10 = vmul.f32 %v316_v4, %v147_v3 }
 0x12c   :  { %v136_v2 = vadd.f32 %v326_v55, %v135_v62  ;;  %v159_v14 = vadd.f32 %v317_v11, %v153_v10 }
 0x12e   :  { %v140_v6 = vsel %vm139_vm11, %v326_v55, %v136_v2 }
 0x12f   :  { %v145_v8 = vsel %vm142_vm12, %v144_v5, %v140_v6 }
 0x130   :  { %v148_v9 = vmul.f32 %v145_v8, %v491_v12 }
 0x132   :  { %v154_v13 = vmul.f32 %v316_v4, %v148_v9 }
 0x134   :  { %v160_v15 = vadd.f32 %v317_v11, %v154_v13 }
 0x136   :  { %v161_v16 = vpack.c.bf16 %v160_v15, %v159_v14 }
 0x138   :  { %238 = vmatmul.bf16.vlgmr.msra.gmra.mxu0 %v161_v16 }
 0x1b5   :  { %v239_v17 = vpop.f32.mrf.mxu0 }
 0x1b6   :  { %v240_v18 = vadd.f32 %v318_v7, %v239_v17 }
 0x1b8   :  { %v244_v19 = vadd.f32 %v240_v18, %v479_v0 }
 0x1ba   :  { %246 = vst [vmem:[#allocation8] sm:$0xff] %v244_v19 }
 0x1bd   :  { %v241_v12 = vpop.f32.mrf.mxu0 }
 0x1be   :  { %v242_v20 = vadd.f32 %v318_v7, %v241_v12 }
 0x1c0   :  { %v245_v21 = vadd.f32 %v242_v20, %v482_v1 }
 0x1c2   :  { %247 = vst [vmem:[#allocation8 + $0x8] sm:$0xff] %v245_v21 }
 0x1c3   :  { %260 = dma.vmem_to_hbm [thread:$0]  %s253_s14, 256, %s255_s2, [#allocation4], %s431_s28, %s431_s28, %s432_s29  }
 0x1c4   :  { %427 = dma.done.wait [#allocation4], 256  }
 0x1c5   :  { %428 = vsyncadd [#allocation4], 4294967040 }
 0x1c6   :  { %265 = vsyncpa [#allocation3], 1 }
 0x1c7   :  { %266 = vsyncpa [#allocation6], 1 }
 0x1c8   :  { %267 = vsyncpa [#allocation4], 1 }

</bundles_post_ra>
